<compile_context>
chip_gen: v7x
topology: tpu7x:2x2x1
jax: 0.10.0
libtpu: 0.0.40
codegen_flags: <defaults>
</compile_context>

<pallas_src>
import math

import jax
import jax.numpy as jnp
from jax.experimental import pallas as pl
from jax.experimental.pallas import tpu as pltpu

BN_EPS = 1e-5
VMEM_LIMIT_BYTES = 32 * 1024 * 1024   # explicit scoped-VMEM budget (safe on v5e/v6e/v7x)


def _round_up(x, m):
    return ((x + m - 1) // m) * m


# ---------------------------------------------------------------------------
# Pass 1: per-channel sum / sum-of-squares of h = x @ w1 + b1, accumulated in
# the resident (2, inter_dim) output block across the "arbitrary" M-tile axis,
# finalized to (mean, inv_std) on the last grid step.
# ---------------------------------------------------------------------------
def _make_stats_kernel(m_valid, m_padded, tile_m):
    inv_m = 1.0 / float(m_valid)

    def kernel(x_ref, w1_ref, b1_ref, stats_ref):
        i = pl.program_id(0)

        @pl.when(i == 0)
        def _():
            stats_ref[...] = jnp.zeros_like(stats_ref)

        h = jnp.dot(x_ref[...], w1_ref[...],
                    preferred_element_type=jnp.float32)
        h = h + b1_ref[...]

        if m_valid != m_padded:
            # Zero the contribution of zero-padded rows (their h would be b1).
            row = i * tile_m + jax.lax.broadcasted_iota(jnp.int32, h.shape, 0)
            h = jnp.where(row < m_valid, h, 0.0)

        tile_sum = jnp.sum(h, axis=0, keepdims=True)
        tile_sq = jnp.sum(h * h, axis=0, keepdims=True)
        stats_ref[...] += jnp.concatenate([tile_sum, tile_sq], axis=0)

        @pl.when(i == pl.num_programs(0) - 1)
        def _():
            sums = stats_ref[...]
            mean = sums[0:1, :] * inv_m
            var = jnp.maximum(sums[1:2, :] * inv_m - mean * mean, 0.0)
            inv_std = jax.lax.rsqrt(var + BN_EPS)
            stats_ref[...] = jnp.concatenate([mean, inv_std], axis=0)

    return kernel


# ---------------------------------------------------------------------------
# Pass 2: recompute h, apply folded BN affine + ReLU, Linear(inter_dim, 1) as
# a VPU mul + lane reduction, lane-dense (1, tile_m) store.
# ---------------------------------------------------------------------------
def _apply_kernel(x_ref, w1_ref, b1_ref, stats_ref, gamma_ref, beta_ref,
                  w2_ref, b2_ref, o_ref):
    h = jnp.dot(x_ref[...], w1_ref[...], preferred_element_type=jnp.float32)
    h = h + b1_ref[...]

    stats = stats_ref[...]
    mean = stats[0:1, :]
    inv_std = stats[1:2, :]
    scale = gamma_ref[...] * inv_std            # fold BN affine
    shift = beta_ref[...] - mean * scale
    h = jnp.maximum(h * scale + shift, 0.0)     # BN + ReLU

    # Linear(inter_dim, 1): broadcast-mul (VPU) + cross-lane sum (XLU),
    # avoids a degenerate 1-output-column MXU matmul.
    out = jnp.sum(h * w2_ref[...], axis=-1) + b2_ref[0]
    o_ref[...] = out.reshape(o_ref.shape)       # lane-dense store


def outlayer_forward(x, params, tile_m=512):
    """x: (B, N, in_num) float -> (B, N, 1) float32 (OutLayer layer_num=2)."""
    B, N, in_num = x.shape
    M = B * N

    w1 = params["w1"].astype(jnp.float32)          # (in_num, inter_dim) = weight.T
    b1 = params["b1"].astype(jnp.float32)          # (1, inter_dim)
    gamma = params["gamma"].astype(jnp.float32)    # (1, inter_dim)
    beta = params["beta"].astype(jnp.float32)      # (1, inter_dim)
    inter_dim = w1.shape[1]
    w2_row = params["w2"].reshape(1, inter_dim).astype(jnp.float32)
    b2 = params["b2"].reshape(1).astype(jnp.float32)

    # Row tiles are multiples of 128 (lane-dense output block); pad M up.
    tile_m = max(128, _round_up(min(tile_m, _round_up(M, 128)), 128))
    m_pad = _round_up(M, tile_m)
    n_tiles = m_pad // tile_m

    x2d = x.reshape(M, in_num).astype(jnp.float32)
    if m_pad != M:
        x2d = jnp.pad(x2d, ((0, m_pad - M), (0, 0)))

    # bf16 MXU operands (f32 accumulation): native MXU rate on v6e/v7x and
    # half the x DMA bytes.  Stats/normalization math stays f32.
    # TODO(synk): with in_num = inter_dim = 32 only 32/128 lanes per vreg are
    # occupied; zero-pad channels to 128 if these model dims become tunable.
    x_bf = x2d.astype(jnp.bfloat16)
    w1_bf = w1.astype(jnp.bfloat16)

    grid = (n_tiles,)
    matmul_flops = 2 * m_pad * in_num * inter_dim
    x_bytes = m_pad * in_num * 2
    w_bytes = in_num * inter_dim * 2

    stats = pl.pallas_call(
        _make_stats_kernel(M, m_pad, tile_m),
        out_shape=jax.ShapeDtypeStruct((2, inter_dim), jnp.float32),
        grid=grid,
        in_specs=[
            pl.BlockSpec((tile_m, in_num), lambda i: (i, 0)),       # x tile
            pl.BlockSpec((in_num, inter_dim), lambda i: (0, 0)),    # w1
            pl.BlockSpec((1, inter_dim), lambda i: (0, 0)),         # b1
        ],
        out_specs=pl.BlockSpec((2, inter_dim), lambda i: (0, 0)),   # resident acc
        compiler_params=pltpu.CompilerParams(
            dimension_semantics=("arbitrary",),   # reduction over M tiles
            vmem_limit_bytes=VMEM_LIMIT_BYTES),
        cost_estimate=pl.CostEstimate(
            flops=matmul_flops + 4 * m_pad * inter_dim,
            transcendentals=inter_dim,
            bytes_accessed=x_bytes + w_bytes + 3 * inter_dim * 4),
    )(x_bf, w1_bf, b1)

    out_row = pl.pallas_call(
        _apply_kernel,
        out_shape=jax.ShapeDtypeStruct((1, m_pad), jnp.float32),
        grid=grid,
        in_specs=[
            pl.BlockSpec((tile_m, in_num), lambda i: (i, 0)),       # x tile
            pl.BlockSpec((in_num, inter_dim), lambda i: (0, 0)),    # w1
            pl.BlockSpec((1, inter_dim), lambda i: (0, 0)),         # b1
            pl.BlockSpec((2, inter_dim), lambda i: (0, 0)),         # mean/inv_std
            pl.BlockSpec((1, inter_dim), lambda i: (0, 0)),         # gamma
            pl.BlockSpec((1, inter_dim), lambda i: (0, 0)),         # beta
            pl.BlockSpec((1, inter_dim), lambda i: (0, 0)),         # w2 row
            pl.BlockSpec(memory_space=pltpu.MemorySpace.SMEM),      # b2 scalar
        ],
        out_specs=pl.BlockSpec((1, tile_m), lambda i: (0, i)),      # lane-dense
        compiler_params=pltpu.CompilerParams(
            dimension_semantics=("parallel",),    # independent row tiles (2 TCs on v7x)
            vmem_limit_bytes=VMEM_LIMIT_BYTES),
        cost_estimate=pl.CostEstimate(
            flops=matmul_flops + 8 * m_pad * inter_dim,
            transcendentals=0,
            bytes_accessed=x_bytes + w_bytes + m_pad * 4 + 6 * inter_dim * 4),
    )(x_bf, w1_bf, b1, stats, gamma, beta, w2_row, b2)

    return out_row[0, :M].reshape(B, N, 1)


def init_outlayer_params(key, in_num, inter_dim):
    """Deterministic init mimicking nn.Linear defaults (kaiming-uniform-ish)."""
    k1, k2, k3, k4 = jax.random.split(key, 4)
    bound1 = 1.0 / math.sqrt(in_num)
    bound2 = 1.0 / math.sqrt(inter_dim)
    return {
        # stored as (fan_in, fan_out) == PyTorch weight.T
        "w1": jax.random.uniform(k1, (in_num, inter_dim), jnp.float32,
                                 -bound1, bound1),
        "b1": jax.random.uniform(k2, (1, inter_dim), jnp.float32,
                                 -bound1, bound1),
        "gamma": jnp.ones((1, inter_dim), jnp.float32),   # BN weight init
        "beta": jnp.zeros((1, inter_dim), jnp.float32),   # BN bias init
        "w2": jax.random.uniform(k3, (inter_dim, 1), jnp.float32,
                                 -bound2, bound2),
        "b2": jax.random.uniform(k4, (1, 1), jnp.float32,
                                 -bound2, bound2),
    }


def _reference_forward_f32(x, params):
    """Pure-f32 reference of the PyTorch module forward (training-mode BN)."""
    B, N, _ = x.shape
    h = x.reshape(B * N, -1) @ params["w1"] + params["b1"]
    mean = jnp.mean(h, axis=0, keepdims=True)
    var = jnp.mean((h - mean) ** 2, axis=0, keepdims=True)
    h = (h - mean) / jnp.sqrt(var + BN_EPS) * params["gamma"] + params["beta"]
    h = jnp.maximum(h, 0.0)
    out = h @ params["w2"] + params["b2"]
    return out.reshape(B, N, 1)


def _reference_forward_matched(x, params):
    """Reference with the kernel's numerics (bf16 MXU operands, E[h^2]-m^2 var)."""
    B, N, _ = x.shape
    xb = x.reshape(B * N, -1).astype(jnp.bfloat16)
    w1b = params["w1"].astype(jnp.bfloat16)
    h = jnp.dot(xb, w1b, preferred_element_type=jnp.float32) + params["b1"]
    mean = jnp.mean(h, axis=0, keepdims=True)
    var = jnp.maximum(jnp.mean(h * h, axis=0, keepdims=True) - mean * mean, 0.0)
    inv_std = jax.lax.rsqrt(var + BN_EPS)
    scale = params["gamma"] * inv_std
    shift = params["beta"] - mean * scale
    h = jnp.maximum(h * scale + shift, 0.0)
    out = (jnp.sum(h * params["w2"].reshape(1, -1), axis=-1, keepdims=True)
           + params["b2"])
    return out.reshape(B, N, 1)


if __name__ == "__main__":
    # OutLayer(in_num=32, layer_num=2, inter_dim=32); x: (batch=2, nodes=72, 32).
    # tile_m=128 at this small size exercises multi-tile stats accumulation and
    # padded-row masking (M = 144 -> M_pad = 256, 2 tiles).
    B, N, in_num, inter_dim = 2, 72, 32, 32

    key = jax.random.PRNGKey(0)
    kx, kp = jax.random.split(key)
    x = jax.random.normal(kx, (B, N, in_num), jnp.float32)
    params = init_outlayer_params(kp, in_num, inter_dim)

    out = outlayer_forward(x, params, tile_m=128)
    out = jax.block_until_ready(out)
    assert out.shape == (B, N, 1)
    assert bool(jnp.all(jnp.isfinite(out)))

    # Tight check against a reference with matched (bf16-matmul) numerics.
    ref_matched = _reference_forward_matched(x, params)
    assert jnp.allclose(out, ref_matched, atol=1e-3, rtol=1e-3), (
        float(jnp.max(jnp.abs(out - ref_matched))))

    # Loose check against the pure-f32 module semantics (bf16 MXU operands only).
    ref_f32 = _reference_forward_f32(x, params)
    assert jnp.allclose(out, ref_f32, atol=2e-2, rtol=2e-2), (
        float(jnp.max(jnp.abs(out - ref_f32))))

    print("KERNEL_OK")
</pallas_src>

<mosaic_0001>
module attributes {stable_mosaic.version = 11 : i64} {
  func.func @kernel(%arg0: i32, %arg1: memref<128x32xbf16, #tpu.memory_space<vmem>>, %arg2: memref<32x32xbf16, #tpu.memory_space<vmem>>, %arg3: memref<1x32xf32, #tpu.memory_space<vmem>>, %arg4: memref<2x32xf32, #tpu.memory_space<vmem>>) attributes {dimension_semantics = [#tpu.dimension_semantics<arbitrary>], iteration_bounds = array<i64: 2>, scalar_prefetch = 0 : i64, scratch_operands = 0 : i64, tpu.core_type = #tpu.core_type<tc>, window_params = [{transform_indices = @transform_0, window_bounds = array<i64: 128, 32>}, {pipeline_mode = #tpu.pipeline_mode<synchronous>, transform_indices = @transform_1, window_bounds = array<i64: 32, 32>}, {pipeline_mode = #tpu.pipeline_mode<synchronous>, transform_indices = @transform_2, window_bounds = array<i64: 1, 32>}, {pipeline_mode = #tpu.pipeline_mode<synchronous>, transform_indices = @transform_3, window_bounds = array<i64: 2, 32>}]} {
    %c0_i32 = arith.constant 0 : i32
    %0 = arith.cmpi eq, %arg0, %c0_i32 : i32
    %1 = arith.extui %0 : i1 to i32
    %c0_i32_0 = arith.constant 0 : i32
    %2 = arith.cmpi ne, %1, %c0_i32_0 : i32
    scf.if %2 {
      %cst_14 = arith.constant 0.000000e+00 : f32
      %29 = vector.broadcast %cst_14 : f32 to vector<2x32xf32>
      %c0_15 = arith.constant 0 : index
      %c0_16 = arith.constant 0 : index
      %30 = vector.load %arg4[%c0_15, %c0_16] : memref<2x32xf32, #tpu.memory_space<vmem>>, vector<2x32xf32>
      tpu.vector_store %arg4[%c0_15, %c0_16], %29 {strides = array<i32>} : memref<2x32xf32, #tpu.memory_space<vmem>>, vector<2x32xf32>,
    } else {
    }
    %c0 = arith.constant 0 : index
    %c0_1 = arith.constant 0 : index
    %3 = vector.load %arg1[%c0, %c0_1] : memref<128x32xbf16, #tpu.memory_space<vmem>>, vector<128x32xbf16>
    %c0_2 = arith.constant 0 : index
    %c0_3 = arith.constant 0 : index
    %4 = vector.load %arg2[%c0_2, %c0_3] : memref<32x32xbf16, #tpu.memory_space<vmem>>, vector<32x32xbf16>
    %cst = arith.constant dense<0.000000e+00> : vector<128x32xf32>
    %5 = tpu.matmul %3, %4, %cst {dimension_numbers = #tpu.dot_dimension_numbers<[1], [0], [0], [1], [0, 0, 1, 1], [], []>} : vector<128x32xbf16>, vector<32x32xbf16>, vector<128x32xf32> -> vector<128x32xf32>
    %c0_4 = arith.constant 0 : index
    %c0_5 = arith.constant 0 : index
    %6 = vector.load %arg3[%c0_4, %c0_5] : memref<1x32xf32, #tpu.memory_space<vmem>>, vector<1x32xf32>
    %7 = vector.broadcast %6 : vector<1x32xf32> to vector<128x32xf32>
    %8 = arith.addf %5, %7 : vector<128x32xf32>
    %c128_i32 = arith.constant 128 : i32
    %9 = arith.muli %arg0, %c128_i32 : i32
    %10 = tpu.iota {dimensions = array<i32: 0>} : vector<128x32xi32>
    %11 = vector.broadcast %9 : i32 to vector<128x32xi32>
    %12 = arith.addi %11, %10 : vector<128x32xi32>
    %c144_i32 = arith.constant 144 : i32
    %13 = vector.broadcast %c144_i32 : i32 to vector<128x32xi32>
    %14 = arith.cmpi slt, %12, %13 : vector<128x32xi32>
    %cst_6 = arith.constant 0.000000e+00 : f32
    %15 = vector.broadcast %cst_6 : f32 to vector<128x32xf32>
    %16 = arith.select %14, %8, %15 : vector<128x32xi1>, vector<128x32xf32>
    %cst_7 = arith.constant dense<0.000000e+00> : vector<32xf32>
    %17 = vector.multi_reduction <add>, %16, %cst_7 [0] : vector<128x32xf32> to vector<32xf32>
    %18 = vector.shape_cast %17 : vector<32xf32> to vector<1x32xf32>
    %19 = arith.mulf %16, %16 : vector<128x32xf32>
    %cst_8 = arith.constant dense<0.000000e+00> : vector<32xf32>
    %20 = vector.multi_reduction <add>, %19, %cst_8 [0] : vector<128x32xf32> to vector<32xf32>
    %21 = vector.shape_cast %20 : vector<32xf32> to vector<1x32xf32>
    %c0_9 = arith.constant 0 : index
    %c0_10 = arith.constant 0 : index
    %22 = vector.load %arg4[%c0_9, %c0_10] : memref<2x32xf32, #tpu.memory_space<vmem>>, vector<2x32xf32>
    %23 = tpu.concatenate %18, %21 in 0 : vector<1x32xf32>, vector<1x32xf32> -> vector<2x32xf32>
    %24 = arith.addf %22, %23 : vector<2x32xf32>
    %c0_11 = arith.constant 0 : index
    %c0_12 = arith.constant 0 : index
    %25 = vector.load %arg4[%c0_11, %c0_12] : memref<2x32xf32, #tpu.memory_space<vmem>>, vector<2x32xf32>
    tpu.vector_store %arg4[%c0_11, %c0_12], %24 {strides = array<i32>} : memref<2x32xf32, #tpu.memory_space<vmem>>, vector<2x32xf32>,
    %c1_i32 = arith.constant 1 : i32
    %26 = arith.cmpi eq, %arg0, %c1_i32 : i32
    %27 = arith.extui %26 : i1 to i32
    %c0_i32_13 = arith.constant 0 : i32
    %28 = arith.cmpi ne, %27, %c0_i32_13 : i32
    scf.if %28 {
      %c0_14 = arith.constant 0 : index
      %c0_15 = arith.constant 0 : index
      %29 = vector.load %arg4[%c0_14, %c0_15] : memref<2x32xf32, #tpu.memory_space<vmem>>, vector<2x32xf32>
      %30 = vector.extract_strided_slice %29 {offsets = [0, 0], sizes = [1, 32], strides = [1, 1]} : vector<2x32xf32> to vector<1x32xf32>
      %cst_16 = arith.constant 0.0069444445 : f32
      %31 = vector.broadcast %cst_16 : f32 to vector<1x32xf32>
      %32 = arith.mulf %30, %31 : vector<1x32xf32>
      %33 = vector.extract_strided_slice %29 {offsets = [1, 0], sizes = [1, 32], strides = [1, 1]} : vector<2x32xf32> to vector<1x32xf32>
      %cst_17 = arith.constant 0.0069444445 : f32
      %34 = vector.broadcast %cst_17 : f32 to vector<1x32xf32>
      %35 = arith.mulf %33, %34 : vector<1x32xf32>
      %36 = arith.mulf %32, %32 : vector<1x32xf32>
      %37 = arith.subf %35, %36 : vector<1x32xf32>
      %cst_18 = arith.constant 0.000000e+00 : f32
      %38 = vector.broadcast %cst_18 : f32 to vector<1x32xf32>
      %39 = arith.maximumf %37, %38 : vector<1x32xf32>
      %cst_19 = arith.constant 9.99999974E-6 : f32
      %40 = vector.broadcast %cst_19 : f32 to vector<1x32xf32>
      %41 = arith.addf %39, %40 : vector<1x32xf32>
      %42 = math.rsqrt %41 : vector<1x32xf32>
      %43 = tpu.concatenate %32, %42 in 0 : vector<1x32xf32>, vector<1x32xf32> -> vector<2x32xf32>
      %c0_20 = arith.constant 0 : index
      %c0_21 = arith.constant 0 : index
      %44 = vector.load %arg4[%c0_20, %c0_21] : memref<2x32xf32, #tpu.memory_space<vmem>>, vector<2x32xf32>
      tpu.vector_store %arg4[%c0_20, %c0_21], %43 {strides = array<i32>} : memref<2x32xf32, #tpu.memory_space<vmem>>, vector<2x32xf32>,
    } else {
    }
    return
  }
  func.func @transform_0(%arg0: i32) -> (i32, i32) {
    %c0_i32 = arith.constant 0 : i32
    %c0_i32_0 = arith.constant 0 : i32
    return %arg0, %c0_i32 : i32, i32
  }
  func.func @transform_1(%arg0: i32) -> (i32, i32) {
    %c0_i32 = arith.constant 0 : i32
    %c0_i32_0 = arith.constant 0 : i32
    %c0_i32_1 = arith.constant 0 : i32
    return %c0_i32, %c0_i32_0 : i32, i32
  }
  func.func @transform_2(%arg0: i32) -> (i32, i32) {
    %c0_i32 = arith.constant 0 : i32
    %c0_i32_0 = arith.constant 0 : i32
    %c0_i32_1 = arith.constant 0 : i32
    return %c0_i32, %c0_i32_0 : i32, i32
  }
  func.func @transform_3(%arg0: i32) -> (i32, i32) {
    %c0_i32 = arith.constant 0 : i32
    %c0_i32_0 = arith.constant 0 : i32
    %c0_i32_1 = arith.constant 0 : i32
    return %c0_i32, %c0_i32_0 : i32, i32
  }
}

</mosaic_0001>

<bundles_post_ra>
// kernel: tpu_custom_call.1
= control target key start
LH: loop header
LB: loop body
LE: loop exit
PB: predicated region body
PF: predicated region fallthrough
CT: control target
= control target key end

     0   :  { %8 = vsyncpa [#allocation3], 0  ;;  %s746_s12 = smov 0   ;;  %s948_s0 = inlined_call_operand.vmem [shape: bf16[256,32], index: 0, kind: input, shape index: {}]   ;;  %s949_s1 = inlined_call_operand.vmem [shape: bf16[32,32], index: 1, kind: input, shape index: {}]   ;;  %s950_s2 = inlined_call_operand.vmem [shape: f32[1,32], index: 2, kind: input, shape index: {}]   ;;  %s951_s3 = inlined_call_operand.hbm [shape: f32[2,32], index: 3, kind: output, shape index: {}]  }
   0x1 LB: > { %s752_s13 = sadd.s32 4294967295, %s722_s12   ;;  %p595_p0 = scmp.ge.s32.totalorder %s722_s12, 1  ;;  %s722_s12 = sphi %s746_s12, %s14_s12  }
   0x2   : > { %p134_p1 = scmp.lt.s32.totalorder %s722_s12, 3 }
   0x4   : > { %p135_p2 = pnand %p595_p0, %p134_p1 }
   0x5   : > { %s596_s14 = sshll.u32 (!%p135_p2), %s752_s13, 4  ;;  %p598_p4 = scmp.ne.s32.totalorder (!%p135_p2), %s752_s13, 0 }
   0x6   : > { %138 = sbr.rel (%p135_p2) target bundleno = 353 (0x161), region = 32  ;;  %p154_p3 = scmp.lt.s32.totalorder (!%p135_p2), %s596_s14, 31 }
   0xd   : > { %s953_s14 = smov (!%p154_p3, %s596_s14), 31  ;;  %163 = sbr.rel (%p598_p4) target bundleno = 20 (0x14), region = 36 }
   0xe   : > { %s597_s15 = sshll.u32 %s953_s14, 2  ;;  %vm164_vm0 = vcmask (!%p598_p4), 254976   ;;  %v724_v0 = vmov (!%p598_p4), 0.0  }
   0xf   : > { %s760_s18 = scalar_lea.vmem %s948_s0, %s597_s15  ;;  %165 = vst.msk [vmem:[#allocation2] sm:$0x3] (!%p598_p4), %vm164_vm0, %v724_v0 }
  0x14 PF: > { %v674_v1 = vld [vmem:[%s949_s1] sm:$0xff]   ;;  %v675_v2 = vld [vmem:[%s949_s1 + $0x8] sm:$0xff]   ;;  %vm245_vm1 = vcmask 261120   ;;  %v678_v5 = vld [vmem:[%s760_s18 + $0x10] sm:$0xff]   ;;  %v368_v11 = vlaneseq  ;;  %s618_s23 = sshll.u32 %s752_s13, 7  ;;  %p619_p5 = scmp.ne.s32.totalorder %s752_s13, 1 }
  0x15   : > { %634 = vmatprep.subr.bf16.mxu0 %v674_v1  ;;  %v676_v3 = vld [vmem:[%s760_s18] sm:$0xff]   ;;  %654 = vmatprep.subr.bf16.mxu1 %v674_v1  ;;  %v677_v4 = vld [vmem:[%s760_s18 + $0x8] sm:$0xff]   ;;  %v682_v8 = vld [vmem:[%s760_s18 + $0x30] sm:$0xff]   ;;  %v789_v14 = vstv %s618_s23 }
  0x16   : > { %635 = vmatpush3.bf16.msra.mxu0 %v674_v1  ;;  %656 = vmatpush3.bf16.msra.mxu1 %v674_v1  ;;  %v680_v6 = vld [vmem:[%s760_s18 + $0x20] sm:$0xff]   ;;  %v681_v7 = vld [vmem:[%s760_s18 + $0x28] sm:$0xff]   ;;  %v679_v9 = vld [vmem:[%s760_s18 + $0x18] sm:$0xff]   ;;  %v785_v12 = vshrl.u32 %v368_v11, 7 }
  0x17   : > { %636 = vmatprep.subr.bf16.mxu0 %v675_v2  ;;  %638 = vmatprep.mubr.msk.bf16.mxu0 %vm245_vm1, %v676_v3  ;;  %v683_v10 = vld [vmem:[%s760_s18 + $0x38] sm:$0xff]   ;;  %v801_v21 = vld [vmem:[%s950_s2] ss:$0 sm:$0xff] }
  0x18   : > { %655 = vmatprep.subr.bf16.mxu1 %v675_v2  ;;  %646 = vmatprep.mubr.msk.bf16.mxu1 %vm245_vm1, %v680_v6  ;;  %v371_v13 = vadd.s32 16, %v785_v12  ;;  %v372_v15 = vadd.s32 24, %v785_v12  ;;  %v370_v16 = vadd.s32 8, %v785_v12  ;;  %v375_v17 = vadd.s32 48, %v785_v12 }
  0x19   : > { %v386_v19 = vadd.s32 %v789_v14, %v785_v12  ;;  %v373_v20 = vadd.s32 32, %v785_v12  ;;  %v376_v23 = vadd.s32 56, %v785_v12  ;;  %v374_v25 = vadd.s32 40, %v785_v12 }
  0x1a   : > { %637 = vmatpush3.bf16.msra.mxu0 %v675_v2  ;;  %657 = vmatpush3.bf16.msra.mxu1 %v675_v2  ;;  %v388_v18 = vadd.s32 %v789_v14, %v371_v13  ;;  %v389_v22 = vadd.s32 %v789_v14, %v372_v15  ;;  %v387_v24 = vadd.s32 %v789_v14, %v370_v16  ;;  %v377_v36 = vadd.s32 64, %v785_v12 }
  0x1b   : > { %v808_v27 = vadd.s32 %v789_v14, %v375_v17  ;;  %vm402_vm3 = vcmp.lt.s32.totalorder %v386_v19, 144  ;;  %v390_v31 = vadd.s32 %v789_v14, %v373_v20  ;;  %v816_v35 = vadd.s32 %v789_v14, %v376_v23 }
  0x1c   : > { %vm404_vm2 = vcmp.lt.s32.totalorder %v388_v18, 144  ;;  %vm405_vm4 = vcmp.lt.s32.totalorder %v389_v22, 144  ;;  %vm403_vm5 = vcmp.lt.s32.totalorder %v387_v24, 144  ;;  %v823_v40 = vadd.s32 %v789_v14, %v374_v25 }
  0x1d   : > { %639 = vmatmul.mubr.msk.bf16.vlgmr.msra.gmra.mrb[0].mxu0 %vm245_vm1, %v677_v4  ;;  %647 = vmatmul.mubr.msk.bf16.vlgmr.msra.gmra.mrb[0].mxu1 %vm245_vm1, %v681_v7  ;;  %vm408_vm6 = vcmp.lt.s32.totalorder %v808_v27, 144  ;;  %v379_v45 = vadd.s32 80, %v785_v12  ;;  %vm406_vm7 = vcmp.lt.s32.totalorder %v390_v31, 144  ;;  %v380_v48 = vadd.s32 88, %v785_v12 }
  0x1e   : > { %642 = vmatprep.mubr.msk.bf16.mxu0 %vm245_vm1, %v678_v5  ;;  %650 = vmatprep.mubr.msk.bf16.mxu1 %vm245_vm1, %v682_v8  ;;  %vm409_vm8 = vcmp.lt.s32.totalorder %v816_v35, 144  ;;  %v394_v50 = vadd.s32 %v789_v14, %v377_v36  ;;  %v378_v51 = vadd.s32 72, %v785_v12  ;;  %vm407_vm9 = vcmp.lt.s32.totalorder %v823_v40, 144 }
  0x1f   : > { %v839_v59 = vadd.s32 %v789_v14, %v379_v45  ;;  %v847_v1 = vadd.s32 %v789_v14, %v380_v48  ;;  %v383_v36 = vadd.s32 112, %v785_v12 }
  0x20   : > { %v395_v7 = vadd.s32 %v789_v14, %v378_v51  ;;  %vm410_vm10 = vcmp.lt.s32.totalorder %v394_v50, 144 }
  0x21   : > { %vm412_vm11 = vcmp.lt.s32.totalorder %v839_v59, 144  ;;  %vm413_vm12 = vcmp.lt.s32.totalorder %v847_v1, 144 }
  0x22   : > { %vm411_vm13 = vcmp.lt.s32.totalorder %v395_v7, 144 }
  0x25   : > { %643 = vmatmul.mubr.msk.bf16.gmra.mrb[4].mxu0 %vm245_vm1, %v679_v9  ;;  %651 = vmatmul.mubr.msk.bf16.gmra.mrb[4].mxu1 %vm245_vm1, %v683_v10 }
  0xf0   : > { %v640_v26 = vpop.f32.mrb[0].mxu0  ;;  %v810_v28 = vpop.f32.mrb[0].mxu1 }
  0xf1   : > { %v313_v29 = vadd.f32 %v640_v26, %v801_v21  ;;  %v304_v30 = vpop.f32.mrb[1].mxu0  ;;  %v336_v32 = vpop.f32.mrb[1].mxu1  ;;  %v381_v26 = vadd.s32 96, %v785_v12 }
  0xf2   : > { %v305_v33 = vadd.f32 %v801_v21, %v304_v30  ;;  %v641_v34 = vpop.f32.mrb[2].mxu0  ;;  %v819_v37 = vpop.f32.mrb[2].mxu1  ;;  %v337_v13 = vadd.f32 %v801_v21, %v336_v32 }
  0xf3   : > { %v316_v38 = vadd.f32 %v641_v34, %v801_v21  ;;  %v307_v39 = vpop.f32.mrb[3].mxu0  ;;  %v825_v41 = vpop.f32.mrb[3].mxu1  ;;  %v420_v42 = vsel %vm404_vm2, %v313_v29, 0.0  ;;  %v382_v29 = vadd.s32 104, %v785_v12  ;;  %v348_v35 = vadd.f32 %v819_v37, %v801_v21 }
  0xf4   : > { %v418_v43 = vsel %vm402_vm3, %v305_v33, 0.0  ;;  %v308_v44 = vadd.f32 %v801_v21, %v307_v39  ;;  %v473_v52 = vmul.f32 %v420_v42, %v420_v42  ;;  %v437_v61 = vsel %vm245_vm1, %v420_v42, 0.0 }
  0xf5   : > { %v471_v46 = vmul.f32 %v418_v43, %v418_v43  ;;  %v421_v47 = vsel %vm405_vm4, %v316_v38, 0.0  ;;  %v434_v53 = vsel %vm245_vm1, %v418_v43, 0.0  ;;  %v384_v38 = vadd.s32 120, %v785_v12 }
  0xf6   : > { %v419_v49 = vsel %vm403_vm5, %v308_v44, 0.0  ;;  %v474_v56 = vmul.f32 %v421_v47, %v421_v47  ;;  %v490_v9 = vsel %vm245_vm1, %v473_v52, 0.0  ;;  %v439_v16 = vsel %vm245_vm1, %v421_v47, 0.0 }
  0xf7   : > { %v435_v54 = vsel %vm245_vm1, %v419_v49, 0.0  ;;  %v472_v55 = vmul.f32 %v419_v49, %v419_v49  ;;  %v487_v62 = vsel %vm245_vm1, %v471_v46, 0.0  ;;  %v426_v27 = vsel %vm410_vm10, %v337_v13, 0.0 }
  0xf8   : > { %v436_v57 = vadd.f32 %v435_v54, %v434_v53  ;;  %v644_v58 = vpop.f32.mrb[4].mxu0  ;;  %v841_v60 = vpop.f32.mrb[4].mxu1  ;;  %v492_v17 = vsel %vm245_vm1, %v474_v56, 0.0  ;;  %v340_v43 = vadd.f32 %v801_v21, %v825_v41  ;;  %v398_v47 = vadd.s32 %v789_v14, %v381_v26 }
  0xf9   : > { %v488_v63 = vsel %vm245_vm1, %v472_v55, 0.0  ;;  %v320_v0 = vpop.f32.mrb[5].mxu0  ;;  %v352_v2 = vpop.f32.mrb[5].mxu1  ;;  %v329_v10 = vadd.f32 %v644_v58, %v801_v21  ;;  %v345_v12 = vadd.f32 %v810_v28, %v801_v21  ;;  %v399_v40 = vadd.s32 %v789_v14, %v382_v29 }
  0xfa   : > { %v438_v3 = vadd.f32 %v437_v61, %v436_v57  ;;  %v489_v4 = vadd.f32 %v488_v63, %v487_v62  ;;  %v321_v5 = vadd.f32 %v801_v21, %v320_v0  ;;  %v645_v6 = vpop.f32.mrb[6].mxu0  ;;  %v851_v8 = vpop.f32.mrb[6].mxu1  ;;  %v479_v51 = vmul.f32 %v426_v27, %v426_v27 }
  0xfb   : > { %v323_v11 = vpop.f32.mrb[7].mxu0  ;;  %v355_v15 = vpop.f32.mrb[7].mxu1  ;;  %v332_v24 = vadd.f32 %v645_v6, %v801_v21  ;;  %v424_v30 = vsel %vm408_vm6, %v329_v10, 0.0  ;;  %v427_v54 = vsel %vm411_vm13, %v340_v43, 0.0  ;;  %v353_v55 = vadd.f32 %v801_v21, %v352_v2 }
  0xfc   : > { %v491_v18 = vadd.f32 %v490_v9, %v489_v4  ;;  %v422_v19 = vsel %vm406_vm7, %v321_v5, 0.0  ;;  %v440_v20 = vadd.f32 %v439_v16, %v438_v3  ;;  %v324_v33 = vadd.f32 %v801_v21, %v323_v11 }
  0xfd   : > { %v441_v22 = vsel %vm245_vm1, %v422_v19, 0.0  ;;  %v475_v23 = vmul.f32 %v422_v19, %v422_v19  ;;  %v425_v39 = vsel %vm409_vm8, %v332_v24, 0.0  ;;  %v477_v44 = vmul.f32 %v424_v30, %v424_v30 }
  0xfe   : > { %v493_v25 = vadd.f32 %v492_v17, %v491_v18  ;;  %v442_v31 = vadd.f32 %v441_v22, %v440_v20  ;;  %v423_v42 = vsel %vm407_vm9, %v324_v33, 0.0  ;;  %v445_v49 = vsel %vm245_vm1, %v424_v30, 0.0 }
  0xff   : > { %v494_v32 = vsel %vm245_vm1, %v475_v23, 0.0  ;;  %v443_v45 = vsel %vm245_vm1, %v423_v42, 0.0  ;;  %v476_v46 = vmul.f32 %v423_v42, %v423_v42  ;;  %v478_v50 = vmul.f32 %v425_v39, %v425_v39 }
 0x100   : > { %v495_v34 = vadd.f32 %v494_v32, %v493_v25  ;;  %v444_v48 = vadd.f32 %v443_v45, %v442_v31  ;;  %v498_v56 = vsel %vm245_vm1, %v477_v44, 0.0  ;;  %v447_v28 = vsel %vm245_vm1, %v425_v39, 0.0 }
 0x101   : > { %v496_v41 = vsel %vm245_vm1, %v476_v46, 0.0  ;;  %v449_v37 = vsel %vm245_vm1, %v426_v27, 0.0  ;;  %vm414_vm14 = vcmp.lt.s32.totalorder %v398_v47, 144  ;;  %v428_v58 = vsel %vm412_vm11, %v345_v12, 0.0 }
 0x102   : > { %v446_v52 = vadd.f32 %v445_v49, %v444_v48  ;;  %v497_v53 = vadd.f32 %v496_v41, %v495_v34  ;;  %v400_v62 = vadd.s32 %v789_v14, %v383_v36  ;;  %v500_v63 = vsel %vm245_vm1, %v478_v50, 0.0 }
 0x103   : > { %v502_v0 = vsel %vm245_vm1, %v479_v51, 0.0  ;;  %v429_v2 = vsel %vm413_vm12, %v348_v35, 0.0  ;;  %v480_v3 = vmul.f32 %v427_v54, %v427_v54  ;;  %v430_v6 = vsel %vm414_vm14, %v353_v55, 0.0 }
 0x104   : > { %v499_v57 = vadd.f32 %v498_v56, %v497_v53  ;;  %v448_v61 = vadd.f32 %v447_v28, %v446_v52  ;;  %v356_v7 = vadd.f32 %v801_v21, %v355_v15  ;;  %v481_v9 = vmul.f32 %v428_v58, %v428_v58 }
 0x105   : > { %v451_v59 = vsel %vm245_vm1, %v427_v54, 0.0  ;;  %v401_v10 = vadd.s32 %v789_v14, %v384_v38  ;;  %vm415_vm15 = vcmp.lt.s32.totalorder %v399_v40, 144  ;;  %v361_v16 = vadd.f32 %v841_v60, %v801_v21 }
 0x106   : > { %v450_v4 = vadd.f32 %v449_v37, %v448_v61  ;;  %v501_v5 = vadd.f32 %v500_v63, %v499_v57  ;;  %vm416_vm0 = vcmp.lt.s32.totalorder %v400_v62, 144  ;;  %v453_v1 = vsel %vm245_vm1, %v428_v58, 0.0  ;;  %v524_v58 = vld [vmem:[#allocation2] sm:$0x3] }
 0x107   : > { %v482_v17 = vmul.f32 %v429_v2, %v429_v2  ;;  %v504_v18 = vsel %vm245_vm1, %v480_v3, 0.0  ;;  %v483_v19 = vmul.f32 %v430_v6, %v430_v6  ;;  %v364_v22 = vadd.f32 %v851_v8, %v801_v21 }
 0x108   : > { %v503_v11 = vadd.f32 %v502_v0, %v501_v5  ;;  %v452_v13 = vadd.f32 %v451_v59, %v450_v4  ;;  %v431_v23 = vsel %vm415_vm15, %v356_v7, 0.0  ;;  %v506_v14 = vsel %vm245_vm1, %v481_v9, 0.0 }
 0x109   : > { %v455_v24 = vsel %vm245_vm1, %v429_v2, 0.0  ;;  %v457_v25 = vsel %vm245_vm1, %v430_v6, 0.0  ;;  %vm417_vm2 = vcmp.lt.s32.totalorder %v401_v10, 144  ;;  %v432_v26 = vsel %vm416_vm0, %v361_v16, 0.0 }
 0x10a   : > { %v454_v20 = vadd.f32 %v453_v1, %v452_v13  ;;  %v505_v15 = vadd.f32 %v504_v18, %v503_v11  ;;  %v508_v30 = vsel %vm245_vm1, %v482_v17, 0.0  ;;  %v510_v31 = vsel %vm245_vm1, %v483_v19, 0.0 }
 0x10b   : > { %v484_v32 = vmul.f32 %v431_v23, %v431_v23  ;;  %v433_v36 = vsel %vm417_vm2, %v364_v22, 0.0  ;;  %v485_v21 = vmul.f32 %v432_v26, %v432_v26  ;;  %v459_v8 = vsel %vm245_vm1, %v431_v23, 0.0 }
 0x10c   : > { %v507_v60 = vadd.f32 %v506_v14, %v505_v15  ;;  %v456_v29 = vadd.f32 %v455_v24, %v454_v20  ;;  %v461_v42 = vsel %vm245_vm1, %v432_v26, 0.0  ;;  %v486_v27 = vmul.f32 %v433_v36, %v433_v36 }
 0x10d   : > { %v512_v43 = vsel %vm245_vm1, %v484_v32, 0.0  ;;  %v514_v46 = vsel %vm245_vm1, %v485_v21, 0.0  ;;  %v463_v47 = vsel %vm245_vm1, %v433_v36, 0.0  ;;  %vm525_vm3 = vcmask 1040384  }
 0x10e   : > { %v458_v33 = vadd.f32 %v457_v25, %v456_v29  ;;  %v509_v34 = vadd.f32 %v508_v30, %v507_v60  ;;  %v516_v35 = vsel %vm245_vm1, %v486_v27, 0.0  ;;  %vm528_vm4 = vcmask 254976  }
 0x110   : > { %v511_v38 = vadd.f32 %v510_v31, %v509_v34  ;;  %v460_v39 = vadd.f32 %v459_v8, %v458_v33 }
 0x112   : > { %v462_v44 = vadd.f32 %v461_v42, %v460_v39  ;;  %v513_v45 = vadd.f32 %v512_v43, %v511_v38 }
 0x114   : > { %v464_v48 = vadd.f32 %v463_v47, %v462_v44  ;;  %v515_v12 = vadd.f32 %v514_v46, %v513_v45 }
 0x116   : > { %v465_v40 = vrot.slane %v464_v48, 4  ;;  %v517_v49 = vadd.f32 %v516_v35, %v515_v12 }
 0x118   : > { %v466_v50 = vadd.f32 %v465_v40, %v464_v48  ;;  %v518_v41 = vrot.slane %v517_v49, 4 }
 0x11a   : > { %v467_v51 = vrot.slane %v466_v50, 2  ;;  %v519_v52 = vadd.f32 %v518_v41, %v517_v49 }
 0x11c   : > { %v468_v53 = vadd.f32 %v467_v51, %v466_v50  ;;  %v520_v54 = vrot.slane %v519_v52, 2 }
 0x11e   : > { %v469_v55 = vrot.slane %v468_v53, 1  ;;  %v521_v56 = vadd.f32 %v520_v54, %v519_v52 }
 0x120   : > { %v522_v28 = vrot.slane %v521_v56, 1  ;;  %v470_v37 = vadd.f32 %v469_v55, %v468_v53 }
 0x121   : > { %533 = sbr.rel (%p619_p5) target bundleno = 328 (0x148), region = 40 }
 0x122   : > { %v523_v57 = vadd.f32 %v522_v28, %v521_v56 }
 0x124   : > { %v526_v61 = vsel %vm525_vm3, %v470_v37, %v523_v57 }
 0x125   : > { %v527_v62 = vadd.f32 %v526_v61, %v524_v58 }
 0x127   : > { %529 = vst.msk [vmem:[#allocation2] sm:$0x3] %vm528_vm4, %v527_v62 }
 0x12e   : > { %v534_v63 = vld [vmem:[#allocation2] sm:$0x3] }
 0x12f   : > { %v535_v0 = vmul.f32 0.0069444445, %v534_v63 }
 0x131   : > { %v536_v2 = vmul.f32 %v535_v0, %v535_v0 }
 0x133   : > { %v538_v3 = vrot.slane %v536_v2, 7 }
 0x135   : > { %v540_v4 = vsub.f32 %v535_v0, %v538_v3 }
 0x137   : > { %v541_v5 = vmax.f32 %v540_v4, 0.0 }
 0x139   : > { %v542_v6 = vadd.f32 1e-05, %v541_v5 }
 0x13b   : > { %684 = vrsqrt.f32 %v542_v6 }
 0x145   : > { %v685_v7 = vpop.eup %684 }
 0x146   : > { %v544_v9 = vsel %vm525_vm3, %v535_v0, %v685_v7 }
 0x147   : > { %545 = vst.msk [vmem:[#allocation2] sm:$0x3] %vm528_vm4, %v544_v9 }
 0x148 PF: > { %p662_p6 = scmp.eq.s32.totalorder %s752_s13, 1  ;;  %s725_s26 = smov [#allocation2]  }
 0x149   : > { %s553_s27 = sshll.u32 %s725_s26, 4  ;;  %s554_s27 = int_to_ptr.vmem [resolvable:$true] %s553_s27 }
 0x14a   : > { %s686_s28 = scalar_lea.vmem %s554_s27, 32  ;;  %p693_p10 = scmp.lt.s32.totalorder %s554_s27, %s554_s27 }
 0x14b   : > { %p687_p7 = scmp.ne.s32.totalorder %s554_s27, %s686_s28  ;;  %p694_p11 = scmp.lt.s32.totalorder %s686_s28, %s686_s28 }
 0x14d   : > { %p688_p8 = pnand %p687_p7, %p662_p6  ;;  %p695_p12 = por %p694_p11, %p693_p10 }
 0x14f   : > { %p689_p9 = pneg %p688_p8 }
 0x151   : > { %p696_p13 = pnand %p695_p12, %p689_p9 }
 0x153   : > { %699 = shalt.err (!%p696_p13)
}
 0x154   : > { %s700_s4 = scalar_lea.hbm %s951_s3, 32 }
 0x155   : > { %p701_p0 = scmp.ne.s32.totalorder %s951_s3, %s700_s4  ;;  %p706_p3 = scmp.lt.u32.totalorder %s700_s4, %s951_s3 }
 0x157   : > { %p702_p1 = pnand %p701_p0, %p662_p6 }
 0x159   : > { %p703_p2 = pneg %p702_p1 }
 0x15b   : > { %p708_p4 = pnand %p706_p3, %p703_p2 }
 0x15d   : > { %711 = shalt.err (!%p708_p4)
}
 0x15e   : > { %659 = dma.vmem_to_hbm [thread:$0]  (%p662_p6), %s554_s27, 32, %s951_s3, [#allocation3]  }
 0x15f   : > { %717 = dma.done.wait (%p662_p6), [#allocation3], 32  }
 0x160   : > { %719 = vsyncadd (%p662_p6), [#allocation3], 4294967264 }
 0x161 PF: > { %s14_s12 = sadd.s32 1, %s722_s12  }
 0x162   : > { %p11_p5 = scmp.ge.s32.totalorder %s14_s12, 4  }
 0x164   :  { %13 = sbr.rel (!%p11_p5) target bundleno = 1 (0x1), region = 67 }
 0x16b   :  { %566 = vsyncpa [#allocation3], 1 }
 0x16c   :  { %568 = vsyncpa [#allocation3 + $0x1], 1 }

</bundles_post_ra>
